<compile_context>
chip_gen: v7x
topology: tpu7x:2x2x1
jax: 0.10.0
libtpu: 0.0.40
codegen_flags: <defaults>
</compile_context>

<pallas_src>
import functools

import jax
import jax.numpy as jnp
from jax.experimental import pallas as pl
from jax.experimental.pallas import tpu as pltpu

_LANE = 128


def _round_up(a, b):
    return (a + b - 1) // b * b


def _stats_kernel(x_ref, mean_ref, std_ref, sum_ref, sumsq_ref, *,
                  inv_count, n_chunks, tail_cols):
    """One (row-tile, spatial-tile) step of the streaming mean/std reduction.

    x_ref:              (TILE_ROWS, TILE_COLS) input block.
    mean_ref, std_ref:  (TILE_ROWS, 1) outputs, written at the last spatial tile.
    sum_ref, sumsq_ref: (TILE_ROWS, 128) f32 per-lane accumulators.
    """
    k = pl.program_id(1)
    last_k = pl.num_programs(1) - 1

    @pl.when(k == 0)
    def _init():
        sum_ref[...] = jnp.zeros_like(sum_ref)
        sumsq_ref[...] = jnp.zeros_like(sumsq_ref)

    def _accumulate(num_chunks, boundary):
        # Static 128-wide lane chunks: per-lane partial sums via VPU adds only;
        # no per-step cross-lane (XLU) reduce. `boundary` > 0 masks the invalid
        # lanes of the final chunk (spatial tail), applied BEFORE squaring so
        # stale VMEM garbage (even NaN) cannot contaminate the sums.
        for c in range(num_chunks):
            xc = x_ref[:, c * _LANE:(c + 1) * _LANE].astype(jnp.float32)
            if boundary and c == num_chunks - 1:
                lane = jax.lax.broadcasted_iota(jnp.int32, xc.shape, 1)
                xc = jnp.where(lane < boundary, xc, 0.0)
            sum_ref[...] += xc
            sumsq_ref[...] += xc * xc

    if tail_cols == 0:
        # Spatial extent divides the tile width: every spatial tile is full.
        _accumulate(n_chunks, 0)
    else:
        @pl.when(k != last_k)
        def _full_tile():
            _accumulate(n_chunks, 0)

        @pl.when(k == last_k)
        def _tail_tile():
            # Only touch the chunks that overlap valid columns; mask the one
            # straddling the boundary (static threshold).
            n_tail = (tail_cols + _LANE - 1) // _LANE
            bnd = tail_cols - (n_tail - 1) * _LANE
            _accumulate(n_tail, 0 if bnd == _LANE else bnd)

    @pl.when(k == last_k)
    def _finalize():
        # Single cross-lane reduce per row tile (instead of one per step).
        s = jnp.sum(sum_ref[...], axis=1, keepdims=True)
        s2 = jnp.sum(sumsq_ref[...], axis=1, keepdims=True)
        mean = s * inv_count
        var = jnp.maximum(s2 * inv_count - mean * mean, 0.0)
        mean_ref[...] = mean
        std_ref[...] = jnp.sqrt(var)  # no epsilon: matches the PyTorch reference


def style_instance_norm_2d(x, *, target_block_bytes=8 * 1024 * 1024,
                           max_tile_rows=512, max_lane_chunks=64):
    """Forward pass of StyleInstanceNorm2d.

    Args:
      x: (N, C, H, W) array (NCHW, like the PyTorch module).
    Returns:
      style: (N, 2*C, 1, 1) = concat(mean, std) along the channel dim.
    """
    assert x.ndim == 4
    N, C, H, W = x.shape
    rows = N * C
    hw = H * W

    itemsize = jnp.dtype(x.dtype).itemsize
    row_mult = max(8, 32 // max(itemsize, 1))          # sublane packing per dtype
    rows_r = _round_up(rows, row_mult)
    hw_r = _round_up(hw, _LANE)

    # --- Tile selection -----------------------------------------------------
    # Columns first (bounded so the unrolled lane-chunk loop stays small), then
    # rows to hit ~target_block_bytes per input block (itemsize-aware).
    tile_cols = min(hw_r, max_lane_chunks * _LANE)
    rows_for_target = max(1, target_block_bytes // (tile_cols * itemsize))
    tile_rows = min(rows_r, max_tile_rows, _round_up(rows_for_target, row_mult))
    # v7x megacore: keep the "parallel" row axis at >= 2 tiles when rows allow.
    if rows_r >= 2 * row_mult:
        tile_rows = min(tile_rows, _round_up(pl.cdiv(rows, 2), row_mult))

    grid = (pl.cdiv(rows, tile_rows), pl.cdiv(hw, tile_cols))
    tail_cols = hw % tile_cols        # valid columns in the last spatial tile

    x2d = x.reshape(rows, hw)         # free reshape; no HBM padding copy

    kernel = functools.partial(
        _stats_kernel,
        inv_count=1.0 / float(hw),
        n_chunks=tile_cols // _LANE,
        tail_cols=tail_cols,
    )

    mean2d, std2d = pl.pallas_call(
        kernel,
        out_shape=(
            jax.ShapeDtypeStruct((rows, 1), jnp.float32),
            jax.ShapeDtypeStruct((rows, 1), jnp.float32),
        ),
        grid_spec=pltpu.PrefetchScalarGridSpec(
            num_scalar_prefetch=0,
            grid=grid,
            in_specs=[pl.BlockSpec((tile_rows, tile_cols), lambda i, k: (i, k))],
            out_specs=[
                pl.BlockSpec((tile_rows, 1), lambda i, k: (i, 0)),
                pl.BlockSpec((tile_rows, 1), lambda i, k: (i, 0)),
            ],
            scratch_shapes=[
                pltpu.VMEM((tile_rows, _LANE), jnp.float32),   # per-lane sum
                pltpu.VMEM((tile_rows, _LANE), jnp.float32),   # per-lane sum of sq
            ],
        ),
        compiler_params=pltpu.CompilerParams(
            dimension_semantics=("parallel", "arbitrary"),
            vmem_limit_bytes=32 * 1024 * 1024,
        ),
    )(x2d)

    mean = mean2d.reshape(N, C, 1, 1)
    std = std2d.reshape(N, C, 1, 1)
    # PyTorch returns the input dtype; stats are computed/accumulated in f32.
    return jnp.concatenate((mean, std), axis=1).astype(x.dtype)


def _reference(x):
    m = jnp.mean(x, axis=(2, 3), keepdims=True)
    std = jnp.sqrt(jnp.mean((x - m) ** 2, axis=(2, 3), keepdims=True))
    return jnp.concatenate((m, std), axis=1)


if __name__ == "__main__":
    key = jax.random.PRNGKey(0)

    # Primary small NCHW shape implied by the module.
    x = jax.random.normal(key, (2, 4, 16, 16), dtype=jnp.float32)
    style = jax.block_until_ready(style_instance_norm_2d(x))
    ref = _reference(x)
    assert style.shape == (2, 8, 1, 1), style.shape
    assert jnp.allclose(style, ref, atol=1e-4, rtol=1e-4), (
        float(jnp.max(jnp.abs(style - ref))))

    # Extra coverage for the pad-free path: unaligned spatial tail (in-kernel
    # lane masking) + partial row blocks, and a multi-spatial-tile reduction.
    for shape in ((2, 3, 7, 9), (1, 4, 96, 96)):
        k2 = jax.random.fold_in(key, shape[-1])
        xt = jax.random.normal(k2, shape, dtype=jnp.float32)
        got = jax.block_until_ready(style_instance_norm_2d(xt))
        want = _reference(xt)
        assert got.shape == want.shape, (got.shape, want.shape)
        assert jnp.allclose(got, want, atol=1e-4, rtol=1e-4), (
            shape, float(jnp.max(jnp.abs(got - want))))

    print("KERNEL_OK")
</pallas_src>

<mosaic_0001>
module attributes {stable_mosaic.version = 11 : i64} {
  func.func @_stats_kernel(%arg0: i32, %arg1: i32, %arg2: memref<8x256xf32, #tpu.memory_space<vmem>>, %arg3: memref<8x1xf32, #tpu.memory_space<vmem>>, %arg4: memref<8x1xf32, #tpu.memory_space<vmem>>, %arg5: memref<8x128xf32, #tpu.memory_space<vmem>>, %arg6: memref<8x128xf32, #tpu.memory_space<vmem>>) attributes {dimension_semantics = [#tpu.dimension_semantics<parallel>, #tpu.dimension_semantics<arbitrary>], iteration_bounds = array<i64: 1, 1>, scalar_prefetch = 0 : i64, scratch_operands = 2 : i64, tpu.core_type = #tpu.core_type<tc>, window_params = [{transform_indices = @transform_0, window_bounds = array<i64: 8, 256>}, {transform_indices = @transform_1, window_bounds = array<i64: 8, 1>}, {transform_indices = @transform_2, window_bounds = array<i64: 8, 1>}]} {
    %c0_i32 = arith.constant 0 : i32
    %0 = arith.cmpi eq, %arg1, %c0_i32 : i32
    %1 = arith.extui %0 : i1 to i32
    %c0_i32_0 = arith.constant 0 : i32
    %2 = arith.cmpi ne, %1, %c0_i32_0 : i32
    scf.if %2 {
      %cst = arith.constant 0.000000e+00 : f32
      %22 = vector.broadcast %cst : f32 to vector<8x128xf32>
      %c0_21 = arith.constant 0 : index
      %c0_22 = arith.constant 0 : index
      %23 = vector.load %arg5[%c0_21, %c0_22] : memref<8x128xf32, #tpu.memory_space<vmem>>, vector<8x128xf32>
      tpu.vector_store %arg5[%c0_21, %c0_22], %22 {strides = array<i32>} : memref<8x128xf32, #tpu.memory_space<vmem>>, vector<8x128xf32>,
      %cst_23 = arith.constant 0.000000e+00 : f32
      %24 = vector.broadcast %cst_23 : f32 to vector<8x128xf32>
      %c0_24 = arith.constant 0 : index
      %c0_25 = arith.constant 0 : index
      %25 = vector.load %arg6[%c0_24, %c0_25] : memref<8x128xf32, #tpu.memory_space<vmem>>, vector<8x128xf32>
      tpu.vector_store %arg6[%c0_24, %c0_25], %24 {strides = array<i32>} : memref<8x128xf32, #tpu.memory_space<vmem>>, vector<8x128xf32>,
    } else {
    }
    %c0 = arith.constant 0 : index
    %c0_1 = arith.constant 0 : index
    %3 = vector.load %arg2[%c0, %c0_1] : memref<8x256xf32, #tpu.memory_space<vmem>>, vector<8x128xf32>
    %c0_2 = arith.constant 0 : index
    %c0_3 = arith.constant 0 : index
    %4 = vector.load %arg5[%c0_2, %c0_3] : memref<8x128xf32, #tpu.memory_space<vmem>>, vector<8x128xf32>
    %5 = arith.addf %4, %3 : vector<8x128xf32>
    %c0_4 = arith.constant 0 : index
    %c0_5 = arith.constant 0 : index
    %6 = vector.load %arg5[%c0_4, %c0_5] : memref<8x128xf32, #tpu.memory_space<vmem>>, vector<8x128xf32>
    tpu.vector_store %arg5[%c0_4, %c0_5], %5 {strides = array<i32>} : memref<8x128xf32, #tpu.memory_space<vmem>>, vector<8x128xf32>,
    %c0_6 = arith.constant 0 : index
    %c0_7 = arith.constant 0 : index
    %7 = vector.load %arg6[%c0_6, %c0_7] : memref<8x128xf32, #tpu.memory_space<vmem>>, vector<8x128xf32>
    %8 = arith.mulf %3, %3 : vector<8x128xf32>
    %9 = arith.addf %7, %8 : vector<8x128xf32>
    %c0_8 = arith.constant 0 : index
    %c0_9 = arith.constant 0 : index
    %10 = vector.load %arg6[%c0_8, %c0_9] : memref<8x128xf32, #tpu.memory_space<vmem>>, vector<8x128xf32>
    tpu.vector_store %arg6[%c0_8, %c0_9], %9 {strides = array<i32>} : memref<8x128xf32, #tpu.memory_space<vmem>>, vector<8x128xf32>,
    %c0_10 = arith.constant 0 : index
    %c128 = arith.constant 128 : index
    %11 = vector.load %arg2[%c0_10, %c128] : memref<8x256xf32, #tpu.memory_space<vmem>>, vector<8x128xf32>
    %c0_11 = arith.constant 0 : index
    %c0_12 = arith.constant 0 : index
    %12 = vector.load %arg5[%c0_11, %c0_12] : memref<8x128xf32, #tpu.memory_space<vmem>>, vector<8x128xf32>
    %13 = arith.addf %12, %11 : vector<8x128xf32>
    %c0_13 = arith.constant 0 : index
    %c0_14 = arith.constant 0 : index
    %14 = vector.load %arg5[%c0_13, %c0_14] : memref<8x128xf32, #tpu.memory_space<vmem>>, vector<8x128xf32>
    tpu.vector_store %arg5[%c0_13, %c0_14], %13 {strides = array<i32>} : memref<8x128xf32, #tpu.memory_space<vmem>>, vector<8x128xf32>,
    %c0_15 = arith.constant 0 : index
    %c0_16 = arith.constant 0 : index
    %15 = vector.load %arg6[%c0_15, %c0_16] : memref<8x128xf32, #tpu.memory_space<vmem>>, vector<8x128xf32>
    %16 = arith.mulf %11, %11 : vector<8x128xf32>
    %17 = arith.addf %15, %16 : vector<8x128xf32>
    %c0_17 = arith.constant 0 : index
    %c0_18 = arith.constant 0 : index
    %18 = vector.load %arg6[%c0_17, %c0_18] : memref<8x128xf32, #tpu.memory_space<vmem>>, vector<8x128xf32>
    tpu.vector_store %arg6[%c0_17, %c0_18], %17 {strides = array<i32>} : memref<8x128xf32, #tpu.memory_space<vmem>>, vector<8x128xf32>,
    %c0_i32_19 = arith.constant 0 : i32
    %19 = arith.cmpi eq, %arg1, %c0_i32_19 : i32
    %20 = arith.extui %19 : i1 to i32
    %c0_i32_20 = arith.constant 0 : i32
    %21 = arith.cmpi ne, %20, %c0_i32_20 : i32
    scf.if %21 {
      %c0_21 = arith.constant 0 : index
      %c0_22 = arith.constant 0 : index
      %22 = vector.load %arg5[%c0_21, %c0_22] : memref<8x128xf32, #tpu.memory_space<vmem>>, vector<8x128xf32>
      %cst = arith.constant dense<0.000000e+00> : vector<8xf32>
      %23 = vector.multi_reduction <add>, %22, %cst [1] : vector<8x128xf32> to vector<8xf32>
      %24 = vector.shape_cast %23 : vector<8xf32> to vector<8x1xf32>
      %c0_23 = arith.constant 0 : index
      %c0_24 = arith.constant 0 : index
      %25 = vector.load %arg6[%c0_23, %c0_24] : memref<8x128xf32, #tpu.memory_space<vmem>>, vector<8x128xf32>
      %cst_25 = arith.constant dense<0.000000e+00> : vector<8xf32>
      %26 = vector.multi_reduction <add>, %25, %cst_25 [1] : vector<8x128xf32> to vector<8xf32>
      %27 = vector.shape_cast %26 : vector<8xf32> to vector<8x1xf32>
      %cst_26 = arith.constant 3.906250e-03 : f32
      %28 = vector.broadcast %cst_26 : f32 to vector<8x1xf32>
      %29 = arith.mulf %24, %28 : vector<8x1xf32>
      %cst_27 = arith.constant 3.906250e-03 : f32
      %30 = vector.broadcast %cst_27 : f32 to vector<8x1xf32>
      %31 = arith.mulf %27, %30 : vector<8x1xf32>
      %32 = arith.mulf %29, %29 : vector<8x1xf32>
      %33 = arith.subf %31, %32 : vector<8x1xf32>
      %cst_28 = arith.constant 0.000000e+00 : f32
      %34 = vector.broadcast %cst_28 : f32 to vector<8x1xf32>
      %35 = arith.maximumf %33, %34 : vector<8x1xf32>
      %c0_29 = arith.constant 0 : index
      %c0_30 = arith.constant 0 : index
      %36 = vector.load %arg3[%c0_29, %c0_30] : memref<8x1xf32, #tpu.memory_space<vmem>>, vector<8x1xf32>
      tpu.vector_store %arg3[%c0_29, %c0_30], %29 {strides = array<i32>} : memref<8x1xf32, #tpu.memory_space<vmem>>, vector<8x1xf32>,
      %37 = math.sqrt %35 : vector<8x1xf32>
      %c0_31 = arith.constant 0 : index
      %c0_32 = arith.constant 0 : index
      %38 = vector.load %arg4[%c0_31, %c0_32] : memref<8x1xf32, #tpu.memory_space<vmem>>, vector<8x1xf32>
      tpu.vector_store %arg4[%c0_31, %c0_32], %37 {strides = array<i32>} : memref<8x1xf32, #tpu.memory_space<vmem>>, vector<8x1xf32>,
    } else {
    }
    return
  }
  func.func @transform_0(%arg0: i32, %arg1: i32) -> (i32, i32) {
    %c0_i32 = arith.constant 0 : i32
    return %arg0, %arg1 : i32, i32
  }
  func.func @transform_1(%arg0: i32, %arg1: i32) -> (i32, i32) {
    %c0_i32 = arith.constant 0 : i32
    %c0_i32_0 = arith.constant 0 : i32
    return %arg0, %c0_i32 : i32, i32
  }
  func.func @transform_2(%arg0: i32, %arg1: i32) -> (i32, i32) {
    %c0_i32 = arith.constant 0 : i32
    %c0_i32_0 = arith.constant 0 : i32
    return %arg0, %c0_i32 : i32, i32
  }
}

</mosaic_0001>

<bundles_post_ra>
// kernel: tpu_custom_call.1
= control target key start
LH: loop header
LB: loop body
LE: loop exit
PB: predicated region body
PF: predicated region fallthrough
CT: control target
= control target key end

     0   :  { %8 = vsyncpa [#allocation5], 0  ;;  %s104_s9 = smov [#allocation4]   ;;  %s140_s0 = inlined_call_operand.hbm [shape: f32[8,256], index: 0, kind: input, shape index: {}]   ;;  %s141_s1 = inlined_call_operand.vmem [shape: f32[8,1], index: 1, kind: output, shape index: {0}]   ;;  %s142_s2 = inlined_call_operand.vmem [shape: f32[8,1], index: 2, kind: output, shape index: {1}]  }
   0x1   :  { %s15_s10 = sshll.u32 %s104_s9, 4  ;;  %s80_s13 = scalar_lea.hbm %s140_s0, 256  ;;  %s16_s10 = int_to_ptr.vmem [resolvable:$true] %s15_s10 }
   0x2   :  { %p81_p0 = scmp.ne.s32.totalorder %s140_s0, %s80_s13  ;;  %p84_p1 = scmp.lt.u32.totalorder %s80_s13, %s140_s0 }
   0x4   :  { %p86_p2 = pnand %p84_p1, %p81_p0 }
   0x6   :  { %89 = shalt.err (!%p86_p2)
}
   0x7   :  { %s90_s18 = scalar_lea.vmem %s16_s10, 256  ;;  %p95_p4 = scmp.lt.s32.totalorder %s16_s10, %s16_s10 }
   0x8   :  { %p91_p3 = scmp.ne.s32.totalorder %s16_s10, %s90_s18  ;;  %p96_p5 = scmp.lt.s32.totalorder %s90_s18, %s90_s18 }
   0xa   :  { %p97_p6 = por %p96_p5, %p95_p4 }
   0xc   :  { %p98_p7 = pnand %p97_p6, %p91_p3 }
   0xe   :  { %101 = shalt.err (!%p98_p7)
}
   0xf   :  { %18 = dma.hbm_to_vmem [thread:$0]  %s140_s0, 256, %s16_s10, [#allocation5]  }
  0x10   :  { %102 = dma.done.wait [#allocation5], 256  }
  0x11   :  { %103 = vsyncadd [#allocation5], 4294967040  ;;  %v28_v0 = vld [vmem:[#allocation4] sm:$0xff]  ;;  %v36_v1 = vld [vmem:[#allocation4 + $0x8] sm:$0xff]  ;;  %vm58_vm0 = vcmask 7168  }
  0x12   :  { %v38_v2 = vadd.f32 %v36_v1, %v28_v0  ;;  %v41_v3 = vmul.f32 %v36_v1, %v36_v1  ;;  %v33_v4 = vmul.f32 %v28_v0, %v28_v0 }
  0x14   :  { %48 = vadd.xlane.f32.xlu0 %v38_v2  ;;  %v42_v5 = vadd.f32 %v41_v3, %v33_v4 }
  0x18   :  { %51 = vadd.xlane.f32.xlu0 %v42_v5 }
  0xa1   :  { %v49_v6 = vpop.xlane.xlu0 %48 }
  0xa2   :  { %v53_v7 = vmul.f32 0.00390625, %v49_v6 }
  0xa4   :  { %59 = vst.msk [vmem:[%s141_s1] sm:$0xff] %vm58_vm0, %v53_v7  ;;  %v55_v9 = vmul.f32 %v53_v7, %v53_v7 }
  0xa5   :  { %v52_v8 = vpop.xlane.xlu0 %51 }
  0xa6   :  { %v54_v10 = vmul.f32 0.00390625, %v52_v8 }
  0xa8   :  { %v56_v11 = vsub.f32 %v54_v10, %v55_v9 }
  0xaa   :  { %v57_v12 = vmax.f32 %v56_v11, 0.0 }
  0xac   :  { %78 = vrsqrt.f32 %v57_v12  ;;  %vm62_vm1 = vcmp.eq.f32.partialorder %v57_v12, inf  ;;  %v65_v15 = vand.u32 2147483648, %v57_v12  ;;  %vm64_vm2 = vcmp.eq.f32.partialorder %v57_v12, 0.0 }
  0xb6   :  { %v79_v13 = vpop.eup %78 }
  0xb7   :  { %v61_v14 = vmul.f32 %v79_v13, %v57_v12 }
  0xb9   :  { %v63_v16 = vsel %vm62_vm1, %v57_v12, %v61_v14 }
  0xba   :  { %v66_v17 = vsel %vm64_vm2, %v65_v15, %v63_v16 }
  0xbb   :  { %67 = vst.msk [vmem:[%s142_s2] sm:$0xff] %vm58_vm0, %v66_v17 }
  0xbc   :  { %76 = vsyncpa [#allocation5], 1 }

</bundles_post_ra>
